<compile_context>
chip_gen: v7x
topology: tpu7x:2x2x1
jax: 0.10.0
libtpu: 0.0.40
codegen_flags: <defaults>
</compile_context>

<pallas_src>
import jax
import jax.numpy as jnp
from jax.experimental import pallas as pl
from jax.experimental.pallas import tpu as pltpu

LANE = 128


def _round_up(x, m):
    return -(-x // m) * m


def dense_graph_conv_kernel(x_ref, adj_ref, w_ref, b_ref, gn_ref, out_ref,
                            h_ref, film_ref, agg_ref):
    k = pl.program_id(1)
    nk = pl.num_programs(1)
    Bb, N, Fin = x_ref.shape
    Fp = agg_ref.shape[-1]           # lane-padded Fout (multiple of 128)
    tile_n = adj_ref.shape[-1]       # neighbor tile width

    # ---- k == 0: one fused bf16 matmul for all six x @ W_* projections ----
    @pl.when(k == 0)
    def _():
        x2d = x_ref[...].reshape(Bb * N, Fin).astype(jnp.bfloat16)
        fused = jnp.dot(x2d, w_ref[...], preferred_element_type=jnp.float32)
        fused = fused + b_ref[...]                               # [Bb*N, 6*Fp] f32
        # h (message projection) kept in bf16 scratch: feeds the MXU every k step.
        h_ref[...] = fused[..., 0:Fp].astype(jnp.bfloat16).reshape(Bb, N, Fp)
        # skip projection + FiLM params stay f32 (used once in the epilogue).
        film_ref[...] = fused[..., Fp:6 * Fp].reshape(Bb, N, 5 * Fp)
        agg_ref[...] = jnp.zeros_like(agg_ref)

    # ---- Neighborhood aggregation over this neighbor tile (bf16 MXU, f32 acc) ----
    start = pl.multiple_of(k * tile_n, tile_n)
    h_tile = h_ref[:, pl.ds(start, tile_n), :]                   # [Bb, tile_n, Fp] bf16
    agg_ref[...] += jnp.einsum('bij,bjf->bif', adj_ref[...], h_tile,
                               preferred_element_type=jnp.float32)

    # ---- last k step: FiLM + ReLU + skip + GraphNorm, lane-dense store ----
    @pl.when(k == nk - 1)
    def _():
        film = film_ref[...]
        hs      = film[..., 0 * Fp:1 * Fp]
        beta    = film[..., 1 * Fp:2 * Fp]
        gamma   = film[..., 2 * Fp:3 * Fp]
        beta_s  = film[..., 3 * Fp:4 * Fp]
        gamma_s = film[..., 4 * Fp:5 * Fp]

        # f32 VPU math (v5e has no bf16 VPU path).
        # TODO(synk): on v6e/v7x this elementwise block could run in bf16.
        msg = jnp.maximum(gamma * agg_ref[...] + beta, 0.0)
        skip = jnp.maximum(gamma_s * hs + beta_s, 0.0)
        y = skip + msg                                           # [Bb, N, Fp]

        # GraphNorm over the node dim (per graph, per channel), folded scale.
        gn = gn_ref[...]                                         # [3, Fp]
        gn_w, gn_b, gn_ms = gn[0:1][None], gn[1:2][None], gn[2:3][None]
        mean = jnp.mean(y, axis=1, keepdims=True)                # [Bb, 1, Fp]
        yc = y - gn_ms * mean
        var = jnp.mean(yc * yc, axis=1, keepdims=True)
        scale = gn_w * jax.lax.rsqrt(var + 1e-5)                 # one per-channel scale
        out_ref[...] = (yc * scale + gn_b).astype(out_ref.dtype)


def _vmem_budget_bytes():
    try:
        cap = pltpu.get_tpu_info().vmem_capacity_bytes
    except Exception:
        cap = 64 * 1024 * 1024            # conservative: v7x physical VMEM
    return min(int(0.70 * cap), 96 * 1024 * 1024)


def _choose_tiles(B, N, Fin, Fp, budget):
    """Largest (block_b, tile_n) fitting the VMEM budget; block_b divides B,
    tile_n divides N; keep >= 2 batch grid steps when possible (megacore)."""
    def usage(bb, tn):
        io = bb * N * (Fin * 4 + tn * 2 + Fp * 4) * 2              # double-buffered blocks
        params = (Fin * 6 * Fp * 2 + 6 * Fp * 4 + 3 * Fp * 4) * 2  # resident weights (x2 buf)
        scratch = bb * N * (Fp * 2 + 5 * Fp * 4 + Fp * 4)          # h(bf16) + film + agg
        tmp = bb * N * 10 * Fp * 4                                 # fused / epilogue temporaries
        return io + params + scratch + tmp

    tn_cands = [N] + [t for t in range((N // LANE) * LANE, 0, -LANE) if N % t == 0]
    tn_cands = list(dict.fromkeys(tn_cands))
    divs = sorted((d for d in range(1, B + 1) if B % d == 0), reverse=True)
    pref = [d for d in divs if B // d >= 2] or divs
    for bb in pref:
        for tn in tn_cands:
            if usage(bb, tn) <= budget:
                return bb, tn
    return 1, tn_cands[-1]


def dense_graph_conv(x, adj, params):
    """x: [B, N, Fin] f32; adj: [B, N, N] dense 0/1 (bf16 preferred).
    Returns concat([GraphNorm(FiLMConv(x, adj)), x], -1): [B, N, Fout + Fin]."""
    B, N, Fin = x.shape
    Fout = params["w_lin"].shape[1]
    Fp = _round_up(Fout, LANE)

    if adj.dtype != jnp.bfloat16:
        # TODO(synk): produce adj in bf16 upstream to avoid this extra HBM pass.
        adj = adj.astype(jnp.bfloat16)

    # Fuse + lane-pad the projection weights once (in real use: precompute these).
    def pad_cols(w):
        return jnp.pad(w, ((0, 0), (0, Fp - w.shape[1])))

    w_cat = jnp.concatenate(
        [pad_cols(params["w_lin"]), pad_cols(params["w_skip"]),
         pad_cols(params["w_film_beta"]), pad_cols(params["w_film_gamma"]),
         pad_cols(params["w_sfilm_beta"]), pad_cols(params["w_sfilm_gamma"])],
        axis=1).astype(jnp.bfloat16)                                    # [Fin, 6*Fp] bf16
    zeros = jnp.zeros((1, Fout), jnp.float32)
    b_cat = jnp.concatenate(
        [pad_cols(zeros), pad_cols(zeros),
         pad_cols(params["b_film_beta"]), pad_cols(params["b_film_gamma"]),
         pad_cols(params["b_sfilm_beta"]), pad_cols(params["b_sfilm_gamma"])],
        axis=1)                                                         # [1, 6*Fp] f32
    gn_cat = jnp.concatenate(
        [pad_cols(params["gn_weight"]), pad_cols(params["gn_bias"]),
         pad_cols(params["gn_mean_scale"])], axis=0)                    # [3, Fp] f32

    budget = _vmem_budget_bytes()
    block_b, tile_n = _choose_tiles(B, N, Fin, Fp, budget)
    grid = (B // block_b, N // tile_n)

    flops = 2 * B * N * Fin * 6 * Fp + 2 * B * N * N * Fp + 12 * B * N * Fp
    bytes_accessed = (B * N * N * 2 + B * N * Fin * 4
                      + Fin * 6 * Fp * 2 + B * N * Fp * 4)

    yn = pl.pallas_call(
        dense_graph_conv_kernel,
        out_shape=jax.ShapeDtypeStruct((B, N, Fp), jnp.float32),
        grid_spec=pltpu.PrefetchScalarGridSpec(
            num_scalar_prefetch=0,
            grid=grid,
            in_specs=[
                pl.BlockSpec((block_b, N, Fin), lambda b, k: (b, 0, 0)),     # x
                pl.BlockSpec((block_b, N, tile_n), lambda b, k: (b, 0, k)),  # adj (bf16)
                # TODO(synk): pipeline_mode=pl.Buffered(1) on the three resident
                # parameter streams would save their second VMEM buffer.
                pl.BlockSpec(w_cat.shape, lambda b, k: (0, 0)),              # fused W
                pl.BlockSpec(b_cat.shape, lambda b, k: (0, 0)),              # fused bias
                pl.BlockSpec(gn_cat.shape, lambda b, k: (0, 0)),             # GraphNorm params
            ],
            out_specs=pl.BlockSpec((block_b, N, Fp), lambda b, k: (b, 0, 0)),
            scratch_shapes=[
                pltpu.VMEM((block_b, N, Fp), jnp.bfloat16),       # h projection (bf16)
                pltpu.VMEM((block_b, N, 5 * Fp), jnp.float32),    # skip proj + FiLM params
                pltpu.VMEM((block_b, N, Fp), jnp.float32),        # agg accumulator
            ],
        ),
        compiler_params=pltpu.CompilerParams(
            dimension_semantics=("parallel", "arbitrary"),
            vmem_limit_bytes=int(budget),
        ),
        cost_estimate=pl.CostEstimate(
            flops=int(flops),
            transcendentals=int(B * Fp),
            bytes_accessed=int(bytes_accessed)),
    )(x, adj, w_cat, b_cat, gn_cat)

    # Strip the lane pad and do the residual concat outside the kernel (keeps the
    # kernel's store lane-dense; x is not re-written through HBM by the kernel).
    return jnp.concatenate([yn[..., :Fout], x], axis=-1)


def init_params(key, in_channels, out_channels):
    ks = jax.random.split(key, 8)
    s = 0.1
    return {
        "w_lin": s * jax.random.normal(ks[0], (in_channels, out_channels), jnp.float32),
        "w_skip": s * jax.random.normal(ks[1], (in_channels, out_channels), jnp.float32),
        "w_film_beta": s * jax.random.normal(ks[2], (in_channels, out_channels), jnp.float32),
        "w_film_gamma": s * jax.random.normal(ks[3], (in_channels, out_channels), jnp.float32),
        "w_sfilm_beta": s * jax.random.normal(ks[4], (in_channels, out_channels), jnp.float32),
        "w_sfilm_gamma": s * jax.random.normal(ks[5], (in_channels, out_channels), jnp.float32),
        "b_film_beta": jnp.zeros((1, out_channels), jnp.float32),
        "b_film_gamma": jnp.ones((1, out_channels), jnp.float32),
        "b_sfilm_beta": jnp.zeros((1, out_channels), jnp.float32),
        "b_sfilm_gamma": jnp.ones((1, out_channels), jnp.float32),
        "gn_weight": jnp.ones((1, out_channels), jnp.float32),
        "gn_bias": jnp.zeros((1, out_channels), jnp.float32),
        "gn_mean_scale": jnp.ones((1, out_channels), jnp.float32),
    }


if __name__ == "__main__":
    B, N = 2, 16
    in_channels, out_channels = 8, 16

    key = jax.random.PRNGKey(0)
    kx, kadj, kp = jax.random.split(key, 3)

    x = jax.random.normal(kx, (B, N, in_channels), jnp.float32)
    # Deterministic dense adjacency (symmetric 0/1, no self loops), built in bf16
    # upstream so the kernel consumes it without an extra cast pass.
    a = jax.random.uniform(kadj, (B, N, N)) < 0.3
    adj01 = jnp.logical_or(a, jnp.swapaxes(a, -1, -2))
    adj01 = jnp.logical_and(adj01, ~jnp.eye(N, dtype=bool)[None])
    adj = adj01.astype(jnp.bfloat16)

    params = init_params(kp, in_channels, out_channels)

    out = dense_graph_conv(x, adj, params)
    out = jax.block_until_ready(out)

    assert out.shape == (B, N, out_channels + in_channels)
    assert bool(jnp.all(jnp.isfinite(out)))
    print("KERNEL_OK")
</pallas_src>

<mosaic_0001>
module attributes {stable_mosaic.version = 11 : i64} {
  func.func @dense_graph_conv_kernel(%arg0: i32, %arg1: i32, %arg2: memref<1x16x8xf32, #tpu.memory_space<vmem>>, %arg3: memref<1x16x16xbf16, #tpu.memory_space<vmem>>, %arg4: memref<8x768xbf16, #tpu.memory_space<vmem>>, %arg5: memref<1x768xf32, #tpu.memory_space<vmem>>, %arg6: memref<3x128xf32, #tpu.memory_space<vmem>>, %arg7: memref<1x16x128xf32, #tpu.memory_space<vmem>>, %arg8: memref<1x16x128xbf16, #tpu.memory_space<vmem>>, %arg9: memref<1x16x640xf32, #tpu.memory_space<vmem>>, %arg10: memref<1x16x128xf32, #tpu.memory_space<vmem>>) attributes {dimension_semantics = [#tpu.dimension_semantics<parallel>, #tpu.dimension_semantics<arbitrary>], iteration_bounds = array<i64: 2, 1>, scalar_prefetch = 0 : i64, scratch_operands = 3 : i64, tpu.core_type = #tpu.core_type<tc>, window_params = [{transform_indices = @transform_0, window_bounds = array<i64: 1, 16, 8>}, {transform_indices = @transform_1, window_bounds = array<i64: 1, 16, 16>}, {pipeline_mode = #tpu.pipeline_mode<synchronous>, transform_indices = @transform_2, window_bounds = array<i64: 8, 768>}, {pipeline_mode = #tpu.pipeline_mode<synchronous>, transform_indices = @transform_3, window_bounds = array<i64: 1, 768>}, {pipeline_mode = #tpu.pipeline_mode<synchronous>, transform_indices = @transform_4, window_bounds = array<i64: 3, 128>}, {transform_indices = @transform_5, window_bounds = array<i64: 1, 16, 128>}]} {
    %c0_i32 = arith.constant 0 : i32
    %0 = arith.cmpi eq, %arg1, %c0_i32 : i32
    %1 = arith.extui %0 : i1 to i32
    %c0_i32_0 = arith.constant 0 : i32
    %2 = arith.cmpi ne, %1, %c0_i32_0 : i32
    scf.if %2 {
      %c0_13 = arith.constant 0 : index
      %c0_14 = arith.constant 0 : index
      %c0_15 = arith.constant 0 : index
      %15 = vector.load %arg2[%c0_13, %c0_14, %c0_15] : memref<1x16x8xf32, #tpu.memory_space<vmem>>, vector<1x16x8xf32>
      %16 = vector.shape_cast %15 : vector<1x16x8xf32> to vector<16x8xf32>
      %17 = arith.truncf %16 : vector<16x8xf32> to vector<16x8xbf16>
      %c0_16 = arith.constant 0 : index
      %c0_17 = arith.constant 0 : index
      %18 = vector.load %arg4[%c0_16, %c0_17] : memref<8x768xbf16, #tpu.memory_space<vmem>>, vector<8x768xbf16>
      %cst_18 = arith.constant dense<0.000000e+00> : vector<16x768xf32>
      %19 = tpu.matmul %17, %18, %cst_18 {dimension_numbers = #tpu.dot_dimension_numbers<[1], [0], [0], [1], [0, 0, 1, 1], [], []>} : vector<16x8xbf16>, vector<8x768xbf16>, vector<16x768xf32> -> vector<16x768xf32>
      %c0_19 = arith.constant 0 : index
      %c0_20 = arith.constant 0 : index
      %20 = vector.load %arg5[%c0_19, %c0_20] : memref<1x768xf32, #tpu.memory_space<vmem>>, vector<1x768xf32>
      %21 = vector.broadcast %20 : vector<1x768xf32> to vector<16x768xf32>
      %22 = arith.addf %19, %21 : vector<16x768xf32>
      %23 = vector.extract_strided_slice %22 {offsets = [0, 0], sizes = [16, 128], strides = [1, 1]} : vector<16x768xf32> to vector<16x128xf32>
      %24 = arith.truncf %23 : vector<16x128xf32> to vector<16x128xbf16>
      %25 = vector.shape_cast %24 : vector<16x128xbf16> to vector<1x16x128xbf16>
      %c0_21 = arith.constant 0 : index
      %c0_22 = arith.constant 0 : index
      %c0_23 = arith.constant 0 : index
      %26 = vector.load %arg8[%c0_21, %c0_22, %c0_23] : memref<1x16x128xbf16, #tpu.memory_space<vmem>>, vector<1x16x128xbf16>
      tpu.vector_store %arg8[%c0_21, %c0_22, %c0_23], %25 {strides = array<i32>} : memref<1x16x128xbf16, #tpu.memory_space<vmem>>, vector<1x16x128xbf16>,
      %27 = vector.extract_strided_slice %22 {offsets = [0, 128], sizes = [16, 640], strides = [1, 1]} : vector<16x768xf32> to vector<16x640xf32>
      %28 = vector.shape_cast %27 : vector<16x640xf32> to vector<1x16x640xf32>
      %c0_24 = arith.constant 0 : index
      %c0_25 = arith.constant 0 : index
      %c0_26 = arith.constant 0 : index
      %29 = vector.load %arg9[%c0_24, %c0_25, %c0_26] : memref<1x16x640xf32, #tpu.memory_space<vmem>>, vector<1x16x640xf32>
      tpu.vector_store %arg9[%c0_24, %c0_25, %c0_26], %28 {strides = array<i32>} : memref<1x16x640xf32, #tpu.memory_space<vmem>>, vector<1x16x640xf32>,
      %cst_27 = arith.constant 0.000000e+00 : f32
      %30 = vector.broadcast %cst_27 : f32 to vector<1x16x128xf32>
      %c0_28 = arith.constant 0 : index
      %c0_29 = arith.constant 0 : index
      %c0_30 = arith.constant 0 : index
      %31 = vector.load %arg10[%c0_28, %c0_29, %c0_30] : memref<1x16x128xf32, #tpu.memory_space<vmem>>, vector<1x16x128xf32>
      tpu.vector_store %arg10[%c0_28, %c0_29, %c0_30], %30 {strides = array<i32>} : memref<1x16x128xf32, #tpu.memory_space<vmem>>, vector<1x16x128xf32>,
    } else {
    }
    %c16_i32 = arith.constant 16 : i32
    %3 = arith.muli %arg1, %c16_i32 : i32
    %4 = tpu.assume_multiple %3, 16 : i32
    %c0 = arith.constant 0 : index
    %5 = arith.index_cast %4 : i32 to index
    %c0_1 = arith.constant 0 : index
    %6 = vector.load %arg8[%c0, %5, %c0_1] : memref<1x16x128xbf16, #tpu.memory_space<vmem>>, vector<1x16x128xbf16>
    %c0_2 = arith.constant 0 : index
    %c0_3 = arith.constant 0 : index
    %c0_4 = arith.constant 0 : index
    %7 = vector.load %arg10[%c0_2, %c0_3, %c0_4] : memref<1x16x128xf32, #tpu.memory_space<vmem>>, vector<1x16x128xf32>
    %c0_5 = arith.constant 0 : index
    %c0_6 = arith.constant 0 : index
    %c0_7 = arith.constant 0 : index
    %8 = vector.load %arg3[%c0_5, %c0_6, %c0_7] : memref<1x16x16xbf16, #tpu.memory_space<vmem>>, vector<1x16x16xbf16>
    "tpu.trace_start"() <{level = 10 : i32, message = "bij,bjf->bif"}> : () -> ()
    %cst = arith.constant dense<0.000000e+00> : vector<1x16x128xf32>
    %9 = tpu.matmul %8, %6, %cst {dimension_numbers = #tpu.dot_dimension_numbers<[2], [1], [1], [2], [0, 0, 0, 1, 1, 2], [0], [0]>} : vector<1x16x16xbf16>, vector<1x16x128xbf16>, vector<1x16x128xf32> -> vector<1x16x128xf32>
    "tpu.trace_stop"() : () -> ()
    %10 = arith.addf %7, %9 : vector<1x16x128xf32>
    %c0_8 = arith.constant 0 : index
    %c0_9 = arith.constant 0 : index
    %c0_10 = arith.constant 0 : index
    %11 = vector.load %arg10[%c0_8, %c0_9, %c0_10] : memref<1x16x128xf32, #tpu.memory_space<vmem>>, vector<1x16x128xf32>
    tpu.vector_store %arg10[%c0_8, %c0_9, %c0_10], %10 {strides = array<i32>} : memref<1x16x128xf32, #tpu.memory_space<vmem>>, vector<1x16x128xf32>,
    %c0_i32_11 = arith.constant 0 : i32
    %12 = arith.cmpi eq, %arg1, %c0_i32_11 : i32
    %13 = arith.extui %12 : i1 to i32
    %c0_i32_12 = arith.constant 0 : i32
    %14 = arith.cmpi ne, %13, %c0_i32_12 : i32
    scf.if %14 {
      %c0_13 = arith.constant 0 : index
      %c0_14 = arith.constant 0 : index
      %c0_15 = arith.constant 0 : index
      %15 = vector.load %arg9[%c0_13, %c0_14, %c0_15] : memref<1x16x640xf32, #tpu.memory_space<vmem>>, vector<1x16x640xf32>
      %16 = vector.extract_strided_slice %15 {offsets = [0, 0, 0], sizes = [1, 16, 128], strides = [1, 1, 1]} : vector<1x16x640xf32> to vector<1x16x128xf32>
      %17 = vector.extract_strided_slice %15 {offsets = [0, 0, 128], sizes = [1, 16, 128], strides = [1, 1, 1]} : vector<1x16x640xf32> to vector<1x16x128xf32>
      %18 = vector.extract_strided_slice %15 {offsets = [0, 0, 256], sizes = [1, 16, 128], strides = [1, 1, 1]} : vector<1x16x640xf32> to vector<1x16x128xf32>
      %19 = vector.extract_strided_slice %15 {offsets = [0, 0, 384], sizes = [1, 16, 128], strides = [1, 1, 1]} : vector<1x16x640xf32> to vector<1x16x128xf32>
      %20 = vector.extract_strided_slice %15 {offsets = [0, 0, 512], sizes = [1, 16, 128], strides = [1, 1, 1]} : vector<1x16x640xf32> to vector<1x16x128xf32>
      %c0_16 = arith.constant 0 : index
      %c0_17 = arith.constant 0 : index
      %c0_18 = arith.constant 0 : index
      %21 = vector.load %arg10[%c0_16, %c0_17, %c0_18] : memref<1x16x128xf32, #tpu.memory_space<vmem>>, vector<1x16x128xf32>
      %22 = arith.mulf %18, %21 : vector<1x16x128xf32>
      %23 = arith.addf %22, %17 : vector<1x16x128xf32>
      %cst_19 = arith.constant 0.000000e+00 : f32
      %24 = vector.broadcast %cst_19 : f32 to vector<1x16x128xf32>
      %25 = arith.maximumf %23, %24 : vector<1x16x128xf32>
      %26 = arith.mulf %20, %16 : vector<1x16x128xf32>
      %27 = arith.addf %26, %19 : vector<1x16x128xf32>
      %cst_20 = arith.constant 0.000000e+00 : f32
      %28 = vector.broadcast %cst_20 : f32 to vector<1x16x128xf32>
      %29 = arith.maximumf %27, %28 : vector<1x16x128xf32>
      %30 = arith.addf %29, %25 : vector<1x16x128xf32>
      %c0_21 = arith.constant 0 : index
      %c0_22 = arith.constant 0 : index
      %31 = vector.load %arg6[%c0_21, %c0_22] : memref<3x128xf32, #tpu.memory_space<vmem>>, vector<3x128xf32>
      %32 = vector.extract_strided_slice %31 {offsets = [0, 0], sizes = [1, 128], strides = [1, 1]} : vector<3x128xf32> to vector<1x128xf32>
      %33 = vector.shape_cast %32 : vector<1x128xf32> to vector<1x1x128xf32>
      %34 = vector.extract_strided_slice %31 {offsets = [1, 0], sizes = [1, 128], strides = [1, 1]} : vector<3x128xf32> to vector<1x128xf32>
      %35 = vector.shape_cast %34 : vector<1x128xf32> to vector<1x1x128xf32>
      %36 = vector.extract_strided_slice %31 {offsets = [2, 0], sizes = [1, 128], strides = [1, 1]} : vector<3x128xf32> to vector<1x128xf32>
      %37 = vector.shape_cast %36 : vector<1x128xf32> to vector<1x1x128xf32>
      %cst_23 = arith.constant dense<0.000000e+00> : vector<1x128xf32>
      %38 = vector.multi_reduction <add>, %30, %cst_23 [1] : vector<1x16x128xf32> to vector<1x128xf32>
      %39 = vector.shape_cast %38 : vector<1x128xf32> to vector<1x1x128xf32>
      %cst_24 = arith.constant 1.600000e+01 : f32
      %40 = vector.broadcast %cst_24 : f32 to vector<1x1x128xf32>
      %41 = arith.divf %39, %40 : vector<1x1x128xf32>
      %42 = arith.mulf %37, %41 : vector<1x1x128xf32>
      %43 = vector.broadcast %42 : vector<1x1x128xf32> to vector<1x16x128xf32>
      %44 = arith.subf %30, %43 : vector<1x16x128xf32>
      %45 = arith.mulf %44, %44 : vector<1x16x128xf32>
      %cst_25 = arith.constant dense<0.000000e+00> : vector<1x128xf32>
      %46 = vector.multi_reduction <add>, %45, %cst_25 [1] : vector<1x16x128xf32> to vector<1x128xf32>
      %47 = vector.shape_cast %46 : vector<1x128xf32> to vector<1x1x128xf32>
      %cst_26 = arith.constant 1.600000e+01 : f32
      %48 = vector.broadcast %cst_26 : f32 to vector<1x1x128xf32>
      %49 = arith.divf %47, %48 : vector<1x1x128xf32>
      %cst_27 = arith.constant 9.99999974E-6 : f32
      %50 = vector.broadcast %cst_27 : f32 to vector<1x1x128xf32>
      %51 = arith.addf %49, %50 : vector<1x1x128xf32>
      %52 = math.rsqrt %51 : vector<1x1x128xf32>
      %53 = arith.mulf %33, %52 : vector<1x1x128xf32>
      %54 = vector.broadcast %53 : vector<1x1x128xf32> to vector<1x16x128xf32>
      %55 = arith.mulf %44, %54 : vector<1x16x128xf32>
      %56 = vector.broadcast %35 : vector<1x1x128xf32> to vector<1x16x128xf32>
      %57 = arith.addf %55, %56 : vector<1x16x128xf32>
      %c0_28 = arith.constant 0 : index
      %c0_29 = arith.constant 0 : index
      %c0_30 = arith.constant 0 : index
      %58 = vector.load %arg7[%c0_28, %c0_29, %c0_30] : memref<1x16x128xf32, #tpu.memory_space<vmem>>, vector<1x16x128xf32>
      tpu.vector_store %arg7[%c0_28, %c0_29, %c0_30], %57 {strides = array<i32>} : memref<1x16x128xf32, #tpu.memory_space<vmem>>, vector<1x16x128xf32>,
    } else {
    }
    return
  }
  func.func @transform_0(%arg0: i32, %arg1: i32) -> (i32, i32, i32) {
    %c0_i32 = arith.constant 0 : i32
    %c0_i32_0 = arith.constant 0 : i32
    %c0_i32_1 = arith.constant 0 : i32
    return %arg0, %c0_i32, %c0_i32_0 : i32, i32, i32
  }
  func.func @transform_1(%arg0: i32, %arg1: i32) -> (i32, i32, i32) {
    %c0_i32 = arith.constant 0 : i32
    %c0_i32_0 = arith.constant 0 : i32
    return %arg0, %c0_i32, %arg1 : i32, i32, i32
  }
  func.func @transform_2(%arg0: i32, %arg1: i32) -> (i32, i32) {
    %c0_i32 = arith.constant 0 : i32
    %c0_i32_0 = arith.constant 0 : i32
    %c0_i32_1 = arith.constant 0 : i32
    return %c0_i32, %c0_i32_0 : i32, i32
  }
  func.func @transform_3(%arg0: i32, %arg1: i32) -> (i32, i32) {
    %c0_i32 = arith.constant 0 : i32
    %c0_i32_0 = arith.constant 0 : i32
    %c0_i32_1 = arith.constant 0 : i32
    return %c0_i32, %c0_i32_0 : i32, i32
  }
  func.func @transform_4(%arg0: i32, %arg1: i32) -> (i32, i32) {
    %c0_i32 = arith.constant 0 : i32
    %c0_i32_0 = arith.constant 0 : i32
    %c0_i32_1 = arith.constant 0 : i32
    return %c0_i32, %c0_i32_0 : i32, i32
  }
  func.func @transform_5(%arg0: i32, %arg1: i32) -> (i32, i32, i32) {
    %c0_i32 = arith.constant 0 : i32
    %c0_i32_0 = arith.constant 0 : i32
    %c0_i32_1 = arith.constant 0 : i32
    return %arg0, %c0_i32, %c0_i32_0 : i32, i32, i32
  }
}

</mosaic_0001>

<bundles_post_ra>
// kernel: tpu_custom_call.1
= control target key start
LH: loop header
LB: loop body
LE: loop exit
PB: predicated region body
PF: predicated region fallthrough
CT: control target
= control target key end

     0   :  { %10 = vsyncpa [#allocation6], 0  ;;  %s1111_s0 = inlined_call_operand.vmem [shape: f32[2,16,8], index: 0, kind: input, shape index: {}]   ;;  %s1112_s1 = inlined_call_operand.vmem [shape: bf16[2,16,16], index: 1, kind: input, shape index: {}]   ;;  %s1113_s2 = inlined_call_operand.vmem [shape: bf16[8,768], index: 2, kind: input, shape index: {}]   ;;  %s1114_s3 = inlined_call_operand.vmem [shape: f32[1,768], index: 3, kind: input, shape index: {}]   ;;  %s1115_s4 = inlined_call_operand.vmem [shape: f32[3,128], index: 4, kind: input, shape index: {}]   ;;  %s1116_s5 = inlined_call_operand.hbm [shape: f32[2,16,128], index: 5, kind: output, shape index: {}]  }
   0x1   :  { %12 = vsyncpa [#allocation6 + $0x1], 0  ;;  %s956_s18 = smov 0   ;;  %s958_s19 = smov 0  }
   0x2   :  { %s960_s20 = smov 0   ;;  %s962_s21 = smov 0  }
   0x3   :  { %s964_s22 = smov 0   ;;  %s966_s23 = smov 0  }
   0x4 LB: > { %s731_s24 = sadd.s32 4294967295, %s918_s23   ;;  %s732_s25 = sadd.s32 4294967294, %s918_s23   ;;  %s918_s23 = sphi %s966_s23, %s18_s23   ;;  %s914_s22 = sphi %s964_s22, %s1123_s22   ;;  %s910_s21 = sphi %s962_s21, %s1122_s21   ;;  %s906_s20 = sphi %s960_s20, %s1121_s20   ;;  %s902_s19 = sphi %s958_s19, %s1120_s19   ;;  %s898_s18 = sphi %s956_s18, %s1119_s18  }
   0x5   : > { %s30_s26 = sadd.s32 1, %s914_s22  ;;  %s154_s27 = sadd.s32 1, %s906_s20 }
   0x6   : > { %p32_p0 = scmp.ge.s32.totalorder %s30_s26, 2  ;;  %p164_p1 = scmp.ne.s32.totalorder %s906_s20, %s902_s19 }
   0x7   : > { %p165_p2 = scmp.eq.s32.totalorder %s731_s24, 1  ;;  %p170_p3 = scmp.ne.s32.totalorder %s902_s19, %s898_s18 }
   0x8   : > { %s1125_s26 = smov (%p32_p0, %s30_s26), 0  ;;  %p171_p5 = scmp.eq.s32.totalorder %s732_s25, 1 }
   0x9   : > { %p996_p4 = por %p165_p2, %p164_p1  ;;  %s151_s29 = ssub.s32 %s914_s22, %s1125_s26 }
   0xa   : > { %p735_p6 = scmp.ge.s32.totalorder %s918_s23, 1  ;;  %p152_p7 = scmp.eq.s32.totalorder %s151_s29, 0 }
   0xb   : > { %p1003_p8 = por %p171_p5, %p170_p3  ;;  %p217_p9 = scmp.lt.s32.totalorder %s918_s23, 3 }
   0xc   : > { %s1009_s6 = scalar_select %p152_p7, %s906_s20, %s154_s27  }
   0xd   : > { %p218_p10 = pnand %p735_p6, %p217_p9 }
   0xe   : > { %v274_v0 = vld [vmem:[%s1113_s2] sm:$0xff] (!%p218_p10)  ;;  %vm328_vm0 = vcmask (!%p218_p10), 1043456   ;;  %p253_p11 = scmp.lt.s32.totalorder (!%p218_p10), %s910_s21, 1  ;;  %v276_v1 = vld [vmem:[%s1113_s2 + $0x10] sm:$0xff] (!%p218_p10)  ;;  %v920_v4 = vmov (!%p218_p10), 0   ;;  %v275_v6 = vld [vmem:[%s1113_s2 + $0x8] sm:$0xff] (!%p218_p10)  ;;  %v279_v17 = vlaneseq (!%p218_p10) }
   0xf   : > { %221 = sbr.rel (%p218_p10) target bundleno = 548 (0x224), region = 40  ;;  %v742_v2 = vcombine.high (!%p218_p10), %v274_v0, %v274_v0  ;;  %v741_v3 = vcombine.low (!%p218_p10), %v274_v0, %v274_v0  ;;  %379 = vmatprep.mubr.bf16.mxu0 (!%p218_p10), %v920_v4  ;;  %v746_v5 = vcombine.high (!%p218_p10), %v276_v1, %v276_v1  ;;  %v744_v7 = vcombine.high (!%p218_p10), %v275_v6, %v275_v6  ;;  %v277_v20 = vld [vmem:[%s1114_s3] sm:$0x3f] (!%p218_p10)  ;;  %s250_s11 = sand.u32 (!%p218_p10), 1, %s902_s19  }
  0x10   : > { %v743_v8 = vcombine.low (!%p218_p10), %v275_v6, %v275_v6  ;;  %422 = vmatprep.mubr.bf16.mxu1 (!%p218_p10), %v920_v4  ;;  %v745_v10 = vcombine.low (!%p218_p10), %v276_v1, %v276_v1  ;;  %vm324_vm1 = vcmask (!%p218_p10), 64512   ;;  %v921_v16 = vmov (!%p218_p10), 0.0   ;;  %s736_s12 = sshll.u32 (!%p218_p10), %s250_s11, 4  ;;  %s1065_s25 = scalar_lea.sflag (!%p218_p10), [#allocation6], %s250_s11 }
  0x11   : > { %747 = vmatprep.subr.msk.bf16.mxu0 (!%p218_p10), %vm328_vm0, %v742_v2  ;;  %v330_v9 = vsel (!%p218_p10), %vm328_vm0, %v741_v3, 0  ;;  %749 = vmatprep.subr.msk.bf16.mxu1 (!%p218_p10), %vm328_vm0, %v744_v7  ;;  %vm922_vm2 = vmmov (!%p218_p10), 0   ;;  %v1034_v18 = vshrl.u32 (!%p218_p10), %v279_v17, 7  ;;  %vm505_vm3 = vcmask (!%p218_p10), 130048   ;;  %s923_s27 = smov (!%p218_p10), [#allocation5]  }
  0x12   : > { %348 = vmatpush1.bf16.msra.mxu0 (!%p218_p10), %v330_v9  ;;  %v336_v11 = vsel (!%p218_p10), %vm328_vm0, %v743_v8, 0  ;;  %v342_v15 = vsel (!%p218_p10), %vm328_vm0, %v745_v10, 0 }
  0x13   : > { %751 = vmatprep.subr.msk.bf16.mxu0 (!%p218_p10), %vm328_vm0, %v746_v5  ;;  %391 = vmatpush1.bf16.msra.mxu1 (!%p218_p10), %v336_v11  ;;  %v281_v19 = vsub.s32 (!%p218_p10), 0, %v1034_v18  ;;  %v285_v26 = vsub.s32 (!%p218_p10), 1, %v1034_v18  ;;  %v297_v28 = vsub.s32 (!%p218_p10), 4, %v1034_v18  ;;  %v301_v29 = vsub.s32 (!%p218_p10), 5, %v1034_v18 }
  0x14   : > { %765 = vmatprep.subr.bf16.mxu1 (!%p218_p10), %v921_v16  ;;  %v293_v54 = vsub.s32 (!%p218_p10), 3, %v1034_v18  ;;  %v289_v55 = vsub.s32 (!%p218_p10), 2, %v1034_v18 }
  0x15   : > { %v282_v21 = vrot.slane (!%p218_p10), %v277_v20, %v281_v19  ;;  %v286_v36 = vrot.slane (!%p218_p10), %v277_v20, %v285_v26  ;;  %v298_v37 = vrot.slane (!%p218_p10), %v277_v20, %v297_v28  ;;  %v302_v38 = vrot.slane (!%p218_p10), %v277_v20, %v301_v29 }
  0x16   : > { %s254_s13 = scalar_select %p253_p11, %s910_s21, 1  ;;  %v294_v56 = vrot.slane %v277_v20, %v293_v54  ;;  %v290_v57 = vrot.slane %v277_v20, %v289_v55 }
  0x18   : > { %s760_s14 = sshll.u32 %s254_s13, 4  ;;  %s761_s24 = sshll.u32 %s254_s13, 3 }
  0x19   : > { %s257_s17 = scalar_lea.vmem %s1111_s0, %s760_s14  ;;  %s265_s29 = scalar_lea.vmem %s1112_s1, %s761_s24 }
  0x1a   : > { %v271_v12 = vld [vmem:[%s257_s17] sm:$0xff]  ;;  %v272_v13 = vld [vmem:[%s257_s17 + $0x8] sm:$0xff]  ;;  %s762_s13 = sshll.u32 %s910_s21, 8  ;;  %s252_s14 = scalar_lea.vmem [#allocation5], %s736_s12 }
  0x1b   : > { %v273_v14 = vpack.c.bf16 %v272_v13, %v271_v12  ;;  %v837_v39 = vld [vmem:[%s265_s29] sm:$0xff]   ;;  %s641_s15 = sshll.u32 %s252_s14, 4  ;;  %s1061_s24 = scalar_lea.hbm %s1116_s5, %s762_s13  ;;  %s1063_s15 = int_to_ptr.vmem [resolvable:$true] %s641_s15 }
  0x1c   : > { %s840_s21 = scalar_lea.vmem %s1063_s15, 256  ;;  %s844_s29 = sshll.u32 %s923_s27, 4  ;;  %s845_s29 = int_to_ptr.vmem [resolvable:$false] %s844_s29 }
  0x1d   : > { %748 = vmatmul.mubr.msk.bf16.vlgmr.msra.gmra.mrb[0].mxu0 %vm324_vm1, %v273_v14  ;;  %750 = vmatmul.mubr.msk.bf16.vlgmr.msra.gmra.mrb[0].mxu1 %vm324_vm1, %v273_v14  ;;  %p841_p12 = scmp.ne.s32.totalorder %s1063_s15, %s840_s21  ;;  %s846_s7 = scalar_lea.vmem %s845_s29, 512 }
  0x1e   : > { %434 = vmatpush1.bf16.msra.mxu0 %v342_v15  ;;  %465 = vmatprep.mubr.bf16.mxu0 %v920_v4  ;;  %p847_p1 = scmp.lt.s32.totalorder %s1063_s15, %s845_s29  ;;  %p848_p2 = scmp.lt.s32.totalorder %s846_s7, %s840_s21 }
  0x1f   : > { %767 = vmatprep.mubr.msk.bf16.mxu1 %vm922_vm2, %v921_v16  ;;  %p842_p13 = pnand %p841_p12, %p996_p4 }
  0x20   : > { %p849_p3 = por %p848_p2, %p847_p1 }
  0x21   : > { %p843_p0 = pneg %p842_p13 }
  0x23   : > { %p850_p5 = pnand %p849_p3, %p843_p0 }
  0x25   : > { %752 = vmatmul.mubr.msk.bf16.vlgmr.msra.gmra.mrb[4].mxu0 %vm324_vm1, %v273_v14 }
  0xf0   : > { %v381_v22 = vpop.f32.mrb[0].mxu0  ;;  %v424_v23 = vpop.f32.mrb[0].mxu1 }
  0xf1   : > { %v383_v24 = vpop.f32.mrb[1].mxu0  ;;  %v426_v25 = vpop.f32.mrb[1].mxu1  ;;  %v382_v31 = vadd.f32 %v381_v22, %v282_v21  ;;  %v425_v60 = vadd.f32 %v424_v23, %v290_v57 }
  0xf2   : > { %v385_v27 = vpop.f32.mrb[2].mxu0  ;;  %v428_v30 = vpop.f32.mrb[2].mxu1  ;;  %v384_v42 = vadd.f32 %v383_v24, %v286_v36  ;;  %v427_v58 = vadd.f32 %v426_v25, %v294_v56 }
  0xf3   : > { %v386_v32 = vadd.f32 %v385_v27, %v282_v21  ;;  %v387_v33 = vpop.f32.mrb[3].mxu0  ;;  %v430_v34 = vpop.f32.mrb[3].mxu1  ;;  %v429_v1 = vadd.f32 %v428_v30, %v290_v57  ;;  %v583_v21 = vld [vmem:[%s1115_s4] sm:$0x7] }
  0xf4   : > { %v388_v47 = vadd.f32 %v387_v33, %v286_v36  ;;  %v431_v61 = vadd.f32 %v430_v34, %v294_v56 }
  0xf5   : > { %v476_v35 = vpack.c.bf16 %v386_v32, %v382_v31 }
  0xf7   : > { %766 = vmatpush3.bf16.msra.mxu1 %v476_v35 }
  0xf8   : > { %v467_v40 = vpop.f32.mrb[4].mxu0 }
  0xf9   : > { %v469_v41 = vpop.f32.mrb[5].mxu0  ;;  %v468_v43 = vadd.f32 %v467_v40, %v298_v37 }
  0xfa   : > { %v470_v44 = vadd.f32 %v469_v41, %v302_v38  ;;  %v471_v45 = vpop.f32.mrb[6].mxu0  ;;  %768 = vmatmul.mubr.msk.bf16.vlgmr.msra.gmra.mrb[4].mxu1 %vm505_vm3, %v837_v39  ;;  %v622_v41 = vrot.slane %v583_v21, %v285_v26 }
  0xfb   : > { %v473_v46 = vpop.f32.mrb[7].mxu0  ;;  %v472_v49 = vadd.f32 %v471_v45, %v298_v37 }
  0xfc   : > { %v575_v48 = vmul.f32 %v470_v44, %v384_v42  ;;  %v474_v50 = vadd.f32 %v473_v46, %v302_v38 }
  0xfe   : > { %v577_v51 = vadd.f32 %v575_v48, %v468_v43  ;;  %v576_v52 = vmul.f32 %v474_v50, %v388_v47 }
 0x100   : > { %v578_v53 = vadd.f32 %v576_v52, %v472_v49  ;;  %v579_v5 = vmax.f32 %v577_v51, 0.0 }
 0x102   : > { %v580_v8 = vmax.f32 %v578_v53, 0.0 }
 0x1cd   : > { %v543_v59 = vpop.f32.mrb[4].mxu1 }
 0x1ce   : > { %v569_v62 = vmul.f32 %v543_v59, %v427_v58  ;;  %v769_v63 = vpop.f32.mrb[5].mxu1 }
 0x1cf   : > { %v546_v0 = vpop.f32.mrb[6].mxu1 }
 0x1d0   : > { %v571_v2 = vadd.f32 %v569_v62, %v425_v60  ;;  %v570_v3 = vmul.f32 %v546_v0, %v431_v61  ;;  %v770_v4 = vpop.f32.mrb[7].mxu1 }
 0x1d2   : > { %v573_v6 = vmax.f32 %v571_v2, 0.0  ;;  %v572_v7 = vadd.f32 %v570_v3, %v429_v1 }
 0x1d4   : > { %v581_v9 = vadd.f32 %v579_v5, %v573_v6  ;;  %v574_v10 = vmax.f32 %v572_v7, 0.0 }
 0x1d6   : > { %v582_v11 = vadd.f32 %v580_v8, %v574_v10 }
 0x1d8   : > { %v584_v12 = vadd.f32 %v582_v11, %v581_v9 }
 0x1da   : > { %v585_v13 = vrot.slane %v584_v12, 4 }
 0x1dc   : > { %v586_v14 = vadd.f32 %v585_v13, %v584_v12 }
 0x1de   : > { %v587_v15 = vrot.slane %v586_v14, 2 }
 0x1e0   : > { %v588_v16 = vadd.f32 %v587_v15, %v586_v14 }
 0x1e2   : > { %v589_v17 = vrot.slane %v588_v16, 1 }
 0x1e4   : > { %v590_v20 = vadd.f32 %v589_v17, %v588_v16 }
 0x1e6   : > { %v592_v22 = vmul.f32 0.0625, %v590_v20 }
 0x1e8   : > { %v593_v23 = vmul.f32 %v592_v22, %v583_v21 }
 0x1ea   : > { %v597_v24 = vrot.slane %v593_v23, %v289_v55 }
 0x1ec   : > { %v598_v25 = vsub.f32 %v581_v9, %v597_v24  ;;  %v599_v27 = vsub.f32 %v582_v11, %v597_v24 }
 0x1ee   : > { %v600_v28 = vmul.f32 %v598_v25, %v598_v25  ;;  %v601_v29 = vmul.f32 %v599_v27, %v599_v27 }
 0x1f0   : > { %v602_v30 = vadd.f32 %v601_v29, %v600_v28 }
 0x1f2   : > { %v603_v31 = vrot.slane %v602_v30, 4 }
 0x1f4   : > { %v604_v32 = vadd.f32 %v603_v31, %v602_v30 }
 0x1f6   : > { %v605_v33 = vrot.slane %v604_v32, 2 }
 0x1f8   : > { %v606_v34 = vadd.f32 %v605_v33, %v604_v32 }
 0x1fa   : > { %v607_v35 = vrot.slane %v606_v34, 1 }
 0x1fc   : > { %v608_v36 = vadd.f32 %v607_v35, %v606_v34 }
 0x1fe   : > { %v609_v37 = vmul.f32 0.0625, %v608_v36 }
 0x200   : > { %v610_v38 = vadd.f32 1e-05, %v609_v37 }
 0x202   : > { %838 = vrsqrt.f32 %v610_v38 }
 0x20c   : > { %v839_v39 = vpop.eup %838 }
 0x20d   : > { %v612_v40 = vmul.f32 %v839_v39, %v583_v21 }
 0x20f   : > { %v616_v42 = vrot.slane %v612_v40, %v281_v19 }
 0x211   : > { %v617_v43 = vmul.f32 %v616_v42, %v598_v25  ;;  %v618_v44 = vmul.f32 %v616_v42, %v599_v27 }
 0x213   : > { %v624_v26 = vadd.f32 %v622_v41, %v618_v44  ;;  %v623_v45 = vadd.f32 %v622_v41, %v617_v43 }
 0x215   : > { %625 = vst [vmem:[%s252_s14] sm:$0xff] %v623_v45  ;;  %626 = vst [vmem:[%s252_s14 + $0x8] sm:$0xff] %v624_v26 }
 0x216   : > { %853 = shalt.err (!%p850_p5)
}
 0x217   : > { %s854_s8 = scalar_lea.hbm %s1061_s24, 256  ;;  %s858_s11 = scalar_lea.hbm %s1116_s5, 512 }
 0x218   : > { %p855_p6 = scmp.ne.s32.totalorder %s1061_s24, %s854_s8  ;;  %p859_p10 = scmp.lt.u32.totalorder %s1061_s24, %s1116_s5 }
 0x219   : > { %p860_p11 = scmp.lt.u32.totalorder %s858_s11, %s854_s8  ;;  %p862_p13 = scmp.lt.u32.totalorder %s854_s8, %s1061_s24 }
 0x21a   : > { %p856_p7 = pnand %p855_p6, %p996_p4 }
 0x21b   : > { %p861_p12 = por %p860_p11, %p859_p10 }
 0x21c   : > { %p857_p9 = pneg %p856_p7 }
 0x21d   : > { %p863_p0 = por %p862_p13, %p861_p12 }
 0x21f   : > { %p864_p1 = pnand %p863_p0, %p857_p9 }
 0x221   : > { %867 = shalt.err (!%p864_p1)
}
 0x222   : > { %s924_s14 = smov 128   ;;  %s925_s16 = smov 8  }
 0x223   : > { %771 = dma.vmem_to_hbm [thread:$0]  (%p996_p4), %s1063_s15, 256, %s1061_s24, %s1065_s25, %s924_s14, %s924_s14, %s925_s16  }
 0x224 PF: > { %p777_p2 = scmp.ge.s32.totalorder %s918_s23, 2  ;;  %s656_s17 = sand.u32 1, %s898_s18  }
 0x225   : > { %s657_s21 = scalar_lea.sflag [#allocation6], %s656_s17 }
 0x226   : > { %p774_p3 = pnand %p777_p2, %p1003_p8 }
 0x228   : > { %893 = dma.done.wait (!%p774_p3), %s657_s21, 256  }
 0x229   : > { %895 = vsyncadd (!%p774_p3), %s657_s21, 4294967040  ;;  %s18_s23 = sadd.s32 1, %s918_s23   ;;  %s1119_s18 = smov %s902_s19 }
 0x22a   : > { %p15_p5 = scmp.ge.s32.totalorder %s18_s23, 4   ;;  %s1120_s19 = smov %s906_s20 }
 0x22b   : > { %s1121_s20 = smov %s1009_s6  ;;  %s1122_s21 = smov %s914_s22 }
 0x22c   : > { %s1123_s22 = smov %s1125_s26  ;;  %17 = sbr.rel (!%p15_p5) target bundleno = 4 (0x4), region = 87 }
 0x233   :  { %662 = vsyncpa [#allocation6], 1 }
 0x234   :  { %664 = vsyncpa [#allocation6 + $0x1], 1 }

</bundles_post_ra>
